<compile_context>
chip_gen: v5e
topology: v5e:2x2
jax: 0.10.0
libtpu: 0.0.40
codegen_flags: <defaults>
</compile_context>

<pallas_src>
import numpy as np
import jax
import jax.numpy as jnp
from jax import lax
from jax.experimental import pallas as pl
from jax.experimental.pallas import tpu as pltpu


def _choose_tile(dim, candidates):
    """Largest candidate dividing `dim`; guarded fallback to `dim` itself."""
    for c in candidates:
        if dim % c == 0:
            return c
    if dim <= max(candidates):
        return dim
    raise ValueError(
        f"no tile in {candidates} divides {dim}; refusing to use a "
        f"full-dimension block that could blow VMEM")


def _is_v7x():
    try:
        dk = jax.devices()[0].device_kind.lower()
    except Exception:
        return False
    return ("v7" in dk) or ("7x" in dk)


def _build_pool_matrix(H, W, k):
    """P[h*W + w, i*Wp + j] = 1/k^2 iff pixel (h, w) lies in pooling window (i, j).

    Zero-padding pixels contribute nothing while the divisor stays k^2, which is
    exactly PyTorch AvgPool2d(count_include_pad=True, stride=k, padding=k//2).
    """
    pad = k // 2
    Hp = (H + 2 * pad - k) // k + 1
    Wp = (W + 2 * pad - k) // k + 1
    P = np.zeros((H * W, Hp * Wp), dtype=np.float32)
    inv = 1.0 / float(k * k)
    for i in range(Hp):
        r0, r1 = max(0, i * k - pad), min(H, i * k - pad + k)
        for j in range(Wp):
            c0, c1 = max(0, j * k - pad), min(W, j * k - pad + k)
            col = i * Wp + j
            for r in range(r0, r1):
                P[r * W + c0:r * W + c1, col] = inv
    return P, Hp, Wp


# ----------------------------- Stage 1: pooling ------------------------------

def _make_pool_flat_kernel(N, Ct, S):
    """Pool kernel writing a lane-dense (Np, Ct*S) block in PyTorch flatten order."""
    def kernel(x_ref, p_ref, o_ref):
        # x_ref: (N, Ct, HW)  p_ref: (HW, S)  o_ref: (Np, Ct*S)
        o_ref[...] = jnp.zeros_like(o_ref)          # zero the padded batch rows too
        for n in range(N):                          # static, tiny batch loop
            pooled = jnp.dot(x_ref[n], p_ref[...],
                             preferred_element_type=jnp.float32)   # (Ct, S)
            # Row-major flatten == PyTorch x2.view(-1, C*h*w) ordering.
            o_ref[pl.ds(n, 1), :] = pooled.reshape(1, Ct * S).astype(o_ref.dtype)
    return kernel


def _pool_kernel_cs(x_ref, p_ref, o_ref):
    # Fallback (lane-sparse) kernel: x_ref (1, Ct, HW), o_ref (1, Ct, S).
    o_ref[0] = jnp.dot(x_ref[0], p_ref[...],
                       preferred_element_type=jnp.float32).astype(o_ref.dtype)


def _pool_to_flat(x3d, P, N, Np, C, HW, S):
    """Average pool -> (Np, K) lane-dense activation matrix (rows N..Np-1 = 0)."""
    K = C * S
    try:
        Ct = _choose_tile(C, (1024, 2048, 512, 256, 128, 64, 32, 16, 8))
        out = pl.pallas_call(
            _make_pool_flat_kernel(N, Ct, S),
            out_shape=jax.ShapeDtypeStruct((Np, K), jnp.float32),
            grid=(C // Ct,),
            in_specs=[
                pl.BlockSpec((N, Ct, HW), lambda c: (0, c, 0)),
                pl.BlockSpec((HW, S), lambda c: (0, 0)),
            ],
            out_specs=pl.BlockSpec((Np, Ct * S), lambda c: (0, c)),
            compiler_params=pltpu.CompilerParams(
                dimension_semantics=("parallel",)),
        )(x3d, P)
        return jax.block_until_ready(out)
    except Exception:
        # Known-good fallback: lane-sparse (N, C, S) output + XLA reshape/pad.
        # Only used if Mosaic rejects the in-kernel (Ct, S)->(1, Ct*S) flatten.
        Ct2 = _choose_tile(C, (512, 256, 128, 64, 32, 16, 8))
        pooled = pl.pallas_call(
            _pool_kernel_cs,
            out_shape=jax.ShapeDtypeStruct((N, C, S), jnp.float32),
            grid=(N, C // Ct2),
            in_specs=[
                pl.BlockSpec((1, Ct2, HW), lambda n, c: (n, c, 0)),
                pl.BlockSpec((HW, S), lambda n, c: (0, 0)),
            ],
            out_specs=pl.BlockSpec((1, Ct2, S), lambda n, c: (n, c, 0)),
            compiler_params=pltpu.CompilerParams(
                dimension_semantics=("parallel", "parallel")),
        )(x3d, P)
        x3 = pooled.reshape(N, K)
        return jnp.pad(x3, ((0, Np - N), (0, 0)))


# ------------------------- Stage 2 (+3): FC / conv ---------------------------

def _fc_relu_conv_kernel(x_ref, w_ref, b1_ref, w2_ref, b2_ref, y_ref, acc_ref):
    # x_ref: (Np, Kt)  w_ref: (O1, Kt)  b1_ref: (1, O1)
    # w2_ref: (O2, O1) b2_ref: (1, O2)  y_ref: (Np, O2)  acc_ref: (Np, O1) f32
    kk = pl.program_id(0)

    @pl.when(kk == 0)
    def _init():
        acc_ref[...] = jnp.zeros_like(acc_ref)

    # Contract dim 1 of both operands: weight used in native (out, in) layout,
    # no transpose materialized.
    acc_ref[...] += lax.dot_general(
        x_ref[...], w_ref[...],
        dimension_numbers=(((1,), (1,)), ((), ())),
        preferred_element_type=jnp.float32)

    @pl.when(kk == pl.num_programs(0) - 1)
    def _fin():
        h = jnp.maximum(acc_ref[...] + b1_ref[...], 0.0)
        y = lax.dot_general(
            h, w2_ref[...],
            dimension_numbers=(((1,), (1,)), ((), ())),
            preferred_element_type=jnp.float32) + b2_ref[...]
        y_ref[...] = y.astype(y_ref.dtype)


def _fc_relu_kernel(x_ref, w_ref, b_ref, h_ref, acc_ref):
    # Unfused FC (v7x path): x (Np, Kt), w (Ot, Kt), b (1, Ot), h (Np, Ot).
    @pl.when(pl.program_id(1) == 0)
    def _init():
        acc_ref[...] = jnp.zeros_like(acc_ref)

    acc_ref[...] += lax.dot_general(
        x_ref[...], w_ref[...],
        dimension_numbers=(((1,), (1,)), ((), ())),
        preferred_element_type=jnp.float32)

    @pl.when(pl.program_id(1) == pl.num_programs(1) - 1)
    def _fin():
        h_ref[...] = jnp.maximum(acc_ref[...] + b_ref[...], 0.0).astype(h_ref.dtype)


def _conv1x1_kernel(h_ref, w_ref, b_ref, o_ref):
    # h (Np, O1), w (O2, O1), b (1, O2), o (Np, O2).
    o_ref[...] = (lax.dot_general(
        h_ref[...], w_ref[...],
        dimension_numbers=(((1,), (1,)), ((), ())),
        preferred_element_type=jnp.float32) + b_ref[...]).astype(o_ref.dtype)


# --------------------------------- Wrapper -----------------------------------

def full_image_encoder(x, fc_w, fc_b, conv_w, conv_b, kernel_size):
    """Mirrors FullImageEncoder.forward (eval mode).

    x:      (N, C, H, W) float32
    fc_w:   (O1, C*Hp*Wp)   nn.Linear weight (O1 = 512)
    fc_b:   (O1,)           nn.Linear bias
    conv_w: (O2, O1, 1, 1)  nn.Conv2d(1x1) weight (O2 = 512)
    conv_b: (O2,)           nn.Conv2d bias
    returns (N, O2, 1, 1) float32
    """
    N, C, H, W = x.shape
    k = int(kernel_size)
    P_np, Hp, Wp = _build_pool_matrix(H, W, k)
    assert Hp == H // k + 1 and Wp == W // k + 1, "inconsistent pooling geometry"
    S = Hp * Wp
    HW = H * W
    O1, K = fc_w.shape
    assert K == C * S, "Linear in_features must equal C * pooled_h * pooled_w"
    O2 = conv_w.shape[0]
    assert conv_w.shape[1] == O1

    P = jnp.asarray(P_np)
    x3d = x.reshape(N, C, HW)               # lane-dense view of the input
    Np = max(8, ((N + 7) // 8) * 8)         # sublane-aligned batch rows

    # ---- Stage 1: average pooling, emitted directly as lane-dense (Np, K) ----
    x3p = _pool_to_flat(x3d, P, N, Np, C, HW, S)

    # TODO(synk): nn.Dropout2d(p=0.5) is identity in eval mode; training-mode
    # channel dropout is not implemented here.

    b1 = fc_b.reshape(1, O1)
    w2 = conv_w.reshape(O2, O1)             # free view of the 1x1 conv weight
    b2 = conv_b.reshape(1, O2)
    Kt = _choose_tile(K, (4096, 2048, 1024, 512, 256, 128))

    if _is_v7x() and O1 > 256 and O1 % 256 == 0:
        # ---- v7x: shard the fc_w stream across the 2 TensorCores ------------
        Ot = 256
        h = pl.pallas_call(
            _fc_relu_kernel,
            out_shape=jax.ShapeDtypeStruct((Np, O1), jnp.float32),
            grid=(O1 // Ot, K // Kt),        # reduction axis last
            in_specs=[
                pl.BlockSpec((Np, Kt), lambda j, kk: (0, kk)),
                pl.BlockSpec((Ot, Kt), lambda j, kk: (j, kk)),
                pl.BlockSpec((1, Ot), lambda j, kk: (0, j)),
            ],
            out_specs=pl.BlockSpec((Np, Ot), lambda j, kk: (0, j)),
            scratch_shapes=[pltpu.VMEM((Np, Ot), jnp.float32)],
            compiler_params=pltpu.CompilerParams(
                dimension_semantics=("parallel", "arbitrary"),
                vmem_limit_bytes=32 * 1024 * 1024),
        )(x3p, fc_w, b1)

        y = pl.pallas_call(
            _conv1x1_kernel,
            out_shape=jax.ShapeDtypeStruct((Np, O2), jnp.float32),
            grid=(1,),
            in_specs=[
                pl.BlockSpec((Np, O1), lambda i: (0, 0)),
                pl.BlockSpec((O2, O1), lambda i: (0, 0)),
                pl.BlockSpec((1, O2), lambda i: (0, 0)),
            ],
            out_specs=pl.BlockSpec((Np, O2), lambda i: (0, 0)),
        )(h, w2, b2)
    else:
        # ---- v5e / v6e / default: one O tile, conv fused into FC finalize ----
        y = pl.pallas_call(
            _fc_relu_conv_kernel,
            out_shape=jax.ShapeDtypeStruct((Np, O2), jnp.float32),
            grid=(K // Kt,),                 # pure reduction grid
            in_specs=[
                pl.BlockSpec((Np, Kt), lambda kk: (0, kk)),
                pl.BlockSpec((O1, Kt), lambda kk: (0, kk)),
                pl.BlockSpec((1, O1), lambda kk: (0, 0)),
                pl.BlockSpec((O2, O1), lambda kk: (0, 0)),
                pl.BlockSpec((1, O2), lambda kk: (0, 0)),
            ],
            out_specs=pl.BlockSpec((Np, O2), lambda kk: (0, 0)),
            scratch_shapes=[pltpu.VMEM((Np, O1), jnp.float32)],
            compiler_params=pltpu.CompilerParams(
                dimension_semantics=("arbitrary",),
                vmem_limit_bytes=32 * 1024 * 1024),
        )(x3p, fc_w, b1, w2, b2)

    return y[:N].reshape(N, O2, 1, 1)


# -------------------------------- Reference ----------------------------------

def _reference(x, fc_w, fc_b, conv_w, conv_b, kernel_size):
    """Pure-JAX reference mirroring the PyTorch code path (eval mode)."""
    N, C, H, W = x.shape
    k = int(kernel_size)
    pad = k // 2
    summed = jax.lax.reduce_window(
        x, 0.0, jax.lax.add,
        window_dimensions=(1, 1, k, k),
        window_strides=(1, 1, k, k),
        padding=((0, 0), (0, 0), (pad, pad), (pad, pad)))
    pooled = summed / float(k * k)          # count_include_pad=True
    x3 = pooled.reshape(N, -1)
    h = jax.nn.relu(x3 @ fc_w.T + fc_b)
    O2, O1 = conv_w.shape[:2]
    y = h @ conv_w.reshape(O2, O1).T + conv_b
    return y.reshape(N, O2, 1, 1)


if __name__ == "__main__":
    key = jax.random.PRNGKey(0)
    # C = 2048 is hard-wired into the module's Linear(2048 * h * w, 512).
    N, C, H, W = 2, 2048, 16, 16
    kernel_size = 16                       # pooled map = (H//k + 1, W//k + 1) = (2, 2)
    Hp, Wp = H // kernel_size + 1, W // kernel_size + 1
    K = C * Hp * Wp                        # 8192
    O1, O2 = 512, 512

    kx, k1, k2, k3, k4 = jax.random.split(key, 5)
    x = jax.random.normal(kx, (N, C, H, W), dtype=jnp.float32)
    s1 = 1.0 / float(np.sqrt(K))
    fc_w = jax.random.uniform(k1, (O1, K), jnp.float32, -s1, s1)
    fc_b = jax.random.uniform(k2, (O1,), jnp.float32, -s1, s1)
    s2 = 1.0 / float(np.sqrt(O1))
    conv_w = jax.random.uniform(k3, (O2, O1, 1, 1), jnp.float32, -s2, s2)
    conv_b = jax.random.uniform(k4, (O2,), jnp.float32, -s2, s2)

    out = full_image_encoder(x, fc_w, fc_b, conv_w, conv_b, kernel_size)
    out = jax.block_until_ready(out)
    assert out.shape == (N, O2, 1, 1)

    ref = _reference(x, fc_w, fc_b, conv_w, conv_b, kernel_size)
    err = float(jnp.max(jnp.abs(out - ref)))
    scale = float(jnp.max(jnp.abs(ref))) + 1e-8
    assert err / scale < 2e-2, f"mismatch: max|diff|={err}, max|ref|={scale}"

    print("KERNEL_OK")
</pallas_src>

<mosaic_0001>
module attributes {stable_mosaic.version = 11 : i64} {
  func.func @kernel(%arg0: i32, %arg1: memref<2x1024x256xf32, #tpu.memory_space<vmem>>, %arg2: memref<256x4xf32, #tpu.memory_space<vmem>>, %arg3: memref<8x4096xf32, #tpu.memory_space<vmem>>) attributes {dimension_semantics = [#tpu.dimension_semantics<parallel>], iteration_bounds = array<i64: 2>, scalar_prefetch = 0 : i64, scratch_operands = 0 : i64, tpu.core_type = #tpu.core_type<tc>, window_params = [{transform_indices = @transform_0, window_bounds = array<i64: 2, 1024, 256>}, {pipeline_mode = #tpu.pipeline_mode<synchronous>, transform_indices = @transform_1, window_bounds = array<i64: 256, 4>}, {transform_indices = @transform_2, window_bounds = array<i64: 8, 4096>}]} {
    %cst = arith.constant 0.000000e+00 : f32
    %0 = vector.broadcast %cst : f32 to vector<8x4096xf32>
    %c0 = arith.constant 0 : index
    %c0_0 = arith.constant 0 : index
    %1 = vector.load %arg3[%c0, %c0_0] : memref<8x4096xf32, #tpu.memory_space<vmem>>, vector<8x4096xf32>
    tpu.vector_store %arg3[%c0, %c0_0], %0 {strides = array<i32>} : memref<8x4096xf32, #tpu.memory_space<vmem>>, vector<8x4096xf32>,
    %c0_1 = arith.constant 0 : index
    %c0_2 = arith.constant 0 : index
    %c0_3 = arith.constant 0 : index
    %2 = vector.load %arg1[%c0_1, %c0_2, %c0_3] : memref<2x1024x256xf32, #tpu.memory_space<vmem>>, vector<1x1024x256xf32>
    %3 = vector.shape_cast %2 : vector<1x1024x256xf32> to vector<1024x256xf32>
    %c0_4 = arith.constant 0 : index
    %c0_5 = arith.constant 0 : index
    %4 = vector.load %arg2[%c0_4, %c0_5] : memref<256x4xf32, #tpu.memory_space<vmem>>, vector<256x4xf32>
    %cst_6 = arith.constant dense<0.000000e+00> : vector<1024x4xf32>
    %5 = tpu.matmul %3, %4, %cst_6 {dimension_numbers = #tpu.dot_dimension_numbers<[1], [0], [0], [1], [0, 0, 1, 1], [], []>} : vector<1024x256xf32>, vector<256x4xf32>, vector<1024x4xf32> -> vector<1024x4xf32>
    %6 = vector.shape_cast %5 : vector<1024x4xf32> to vector<1x4096xf32>
    %c0_7 = arith.constant 0 : index
    %c0_8 = arith.constant 0 : index
    %7 = vector.load %arg3[%c0_7, %c0_8] : memref<8x4096xf32, #tpu.memory_space<vmem>>, vector<1x4096xf32>
    tpu.vector_store %arg3[%c0_7, %c0_8], %6 {strides = array<i32>} : memref<8x4096xf32, #tpu.memory_space<vmem>>, vector<1x4096xf32>,
    %c1 = arith.constant 1 : index
    %c0_9 = arith.constant 0 : index
    %c0_10 = arith.constant 0 : index
    %8 = vector.load %arg1[%c1, %c0_9, %c0_10] : memref<2x1024x256xf32, #tpu.memory_space<vmem>>, vector<1x1024x256xf32>
    %9 = vector.shape_cast %8 : vector<1x1024x256xf32> to vector<1024x256xf32>
    %c0_11 = arith.constant 0 : index
    %c0_12 = arith.constant 0 : index
    %10 = vector.load %arg2[%c0_11, %c0_12] : memref<256x4xf32, #tpu.memory_space<vmem>>, vector<256x4xf32>
    %cst_13 = arith.constant dense<0.000000e+00> : vector<1024x4xf32>
    %11 = tpu.matmul %9, %10, %cst_13 {dimension_numbers = #tpu.dot_dimension_numbers<[1], [0], [0], [1], [0, 0, 1, 1], [], []>} : vector<1024x256xf32>, vector<256x4xf32>, vector<1024x4xf32> -> vector<1024x4xf32>
    %12 = vector.shape_cast %11 : vector<1024x4xf32> to vector<1x4096xf32>
    %c1_14 = arith.constant 1 : index
    %c0_15 = arith.constant 0 : index
    %13 = vector.load %arg3[%c1_14, %c0_15] : memref<8x4096xf32, #tpu.memory_space<vmem>>, vector<1x4096xf32>
    tpu.vector_store %arg3[%c1_14, %c0_15], %12 {strides = array<i32>} : memref<8x4096xf32, #tpu.memory_space<vmem>>, vector<1x4096xf32>,
    return
  }
  func.func @transform_0(%arg0: i32) -> (i32, i32, i32) {
    %c0_i32 = arith.constant 0 : i32
    %c0_i32_0 = arith.constant 0 : i32
    %c0_i32_1 = arith.constant 0 : i32
    return %c0_i32, %arg0, %c0_i32_0 : i32, i32, i32
  }
  func.func @transform_1(%arg0: i32) -> (i32, i32) {
    %c0_i32 = arith.constant 0 : i32
    %c0_i32_0 = arith.constant 0 : i32
    %c0_i32_1 = arith.constant 0 : i32
    return %c0_i32, %c0_i32_0 : i32, i32
  }
  func.func @transform_2(%arg0: i32) -> (i32, i32) {
    %c0_i32 = arith.constant 0 : i32
    %c0_i32_0 = arith.constant 0 : i32
    return %c0_i32, %arg0 : i32, i32
  }
}

module attributes {stable_mosaic.version = 11 : i64} {
  func.func @_pool_kernel_cs(%arg0: i32, %arg1: i32, %arg2: memref<1x512x256xf32, #tpu.memory_space<vmem>>, %arg3: memref<256x4xf32, #tpu.memory_space<vmem>>, %arg4: memref<1x512x4xf32, #tpu.memory_space<vmem>>) attributes {dimension_semantics = [#tpu.dimension_semantics<parallel>, #tpu.dimension_semantics<parallel>], iteration_bounds = array<i64: 2, 4>, scalar_prefetch = 0 : i64, scratch_operands = 0 : i64, tpu.core_type = #tpu.core_type<tc>, window_params = [{transform_indices = @transform_0, window_bounds = array<i64: 1, 512, 256>}, {pipeline_mode = #tpu.pipeline_mode<synchronous>, transform_indices = @transform_1, window_bounds = array<i64: 256, 4>}, {transform_indices = @transform_2, window_bounds = array<i64: 1, 512, 4>}]} {
    %c0 = arith.constant 0 : index
    %c0_0 = arith.constant 0 : index
    %c0_1 = arith.constant 0 : index
    %0 = vector.load %arg2[%c0, %c0_0, %c0_1] : memref<1x512x256xf32, #tpu.memory_space<vmem>>, vector<1x512x256xf32>
    %1 = vector.shape_cast %0 : vector<1x512x256xf32> to vector<512x256xf32>
    %c0_2 = arith.constant 0 : index
    %c0_3 = arith.constant 0 : index
    %2 = vector.load %arg3[%c0_2, %c0_3] : memref<256x4xf32, #tpu.memory_space<vmem>>, vector<256x4xf32>
    %cst = arith.constant dense<0.000000e+00> : vector<512x4xf32>
    %3 = tpu.matmul %1, %2, %cst {dimension_numbers = #tpu.dot_dimension_numbers<[1], [0], [0], [1], [0, 0, 1, 1], [], []>} : vector<512x256xf32>, vector<256x4xf32>, vector<512x4xf32> -> vector<512x4xf32>
    %c0_4 = arith.constant 0 : index
    %c0_5 = arith.constant 0 : index
    %c0_6 = arith.constant 0 : index
    %4 = vector.load %arg4[%c0_4, %c0_5, %c0_6] : memref<1x512x4xf32, #tpu.memory_space<vmem>>, vector<1x512x4xf32>
    %5 = vector.shape_cast %4 : vector<1x512x4xf32> to vector<512x4xf32>
    %6 = vector.shape_cast %3 : vector<512x4xf32> to vector<1x512x4xf32>
    tpu.vector_store %arg4[%c0_4, %c0_5, %c0_6], %6 {strides = array<i32>} : memref<1x512x4xf32, #tpu.memory_space<vmem>>, vector<1x512x4xf32>,
    return
  }
  func.func @transform_0(%arg0: i32, %arg1: i32) -> (i32, i32, i32) {
    %c0_i32 = arith.constant 0 : i32
    %c0_i32_0 = arith.constant 0 : i32
    return %arg0, %arg1, %c0_i32 : i32, i32, i32
  }
  func.func @transform_1(%arg0: i32, %arg1: i32) -> (i32, i32) {
    %c0_i32 = arith.constant 0 : i32
    %c0_i32_0 = arith.constant 0 : i32
    %c0_i32_1 = arith.constant 0 : i32
    return %c0_i32, %c0_i32_0 : i32, i32
  }
  func.func @transform_2(%arg0: i32, %arg1: i32) -> (i32, i32, i32) {
    %c0_i32 = arith.constant 0 : i32
    %c0_i32_0 = arith.constant 0 : i32
    return %arg0, %arg1, %c0_i32 : i32, i32, i32
  }
}

</mosaic_0001>

<bundles_post_ra>
// kernel: tpu_custom_call.1
= control target key start
LH: loop header
LB: loop body
LE: loop exit
PB: predicated region body
PF: predicated region fallthrough
CT: control target
= control target key end

     0   :  { %7 = vsyncpa [#allocation3], 0  ;;  %s1643_s0 = inlined_call_operand.hbm [shape: f32[2,2048,256], index: 0, kind: input, shape index: {}]   ;;  %s1644_s1 = inlined_call_operand.vmem [shape: f32[256,4], index: 1, kind: input, shape index: {}]   ;;  %s1645_s2 = inlined_call_operand.vmem [shape: f32[2,2048,4], index: 2, kind: output, shape index: {}]  }
   0x1   :  { %9 = vsyncpa [#allocation3 + $0x1], 0  ;;  %s1173_s9 = smov 0   ;;  %s1175_s10 = smov 0  }
   0x2   :  { %s1177_s11 = smov 0   ;;  %s1179_s12 = smov 0  }
   0x3   :  { %s1181_s13 = smov 0   ;;  %s1183_s14 = smov 0  }
   0x4   :  { %s1185_s15 = smov 0   ;;  %s1187_s16 = smov 0  }
   0x5 LB: > { %s936_s17 = sadd.s32 4294967295, %s1154_s16   ;;  %s24_s18 = sadd.s32 1, %s1146_s14  ;;  %s1154_s16 = sphi %s1187_s16, %s15_s16   ;;  %s1150_s15 = sphi %s1185_s15, %s1654_s15   ;;  %s1146_s14 = sphi %s1183_s14, %s1653_s14   ;;  %s1142_s13 = sphi %s1181_s13, %s1652_s13   ;;  %s1138_s12 = sphi %s1179_s12, %s1651_s12   ;;  %s1134_s11 = sphi %s1177_s11, %s1650_s11   ;;  %s1130_s10 = sphi %s1175_s10, %s1649_s10   ;;  %s1126_s9 = sphi %s1173_s9, %s1648_s9  }
   0x6   : > { %p25_p0 = scmp.ge.s32.totalorder %s24_s18, 4  ;;  %s27_s19 = sadd.s32 1, %s1150_s15 }
   0x7   : > { %s36_s20 = sadd.s32 1, %s1134_s11  ;;  %p43_p1 = scmp.ne.s32.totalorder %s1134_s11, %s1130_s10 }
   0x8   : > { %s1656_s18 = smov (%p25_p0, %s24_s18), 0  ;;  %s1658_s19 = smov (!%p25_p0, %s27_s19), %s1150_s15 }
   0x9   : > { %s32_s21 = ssub.s32 %s1146_s14, %s1656_s18  ;;  %p44_p2 = scmp.eq.s32.totalorder %s1154_s16, 0 }
   0xa   : > { %p29_p3 = scmp.ge.s32.totalorder %s1658_s19, 2  ;;  %p49_p4 = scmp.ne.s32.totalorder %s1130_s10, %s1126_s9 }
   0xb   : > { %p1224_p5 = por %p44_p2, %p43_p1  ;;  %p50_p6 = scmp.eq.s32.totalorder %s936_s17, 0 }
   0xc   : > { %s1660_s19 = smov (%p29_p3, %s1658_s19), 0  ;;  %p991_p8 = scmp.lt.s32.totalorder %s1154_s16, 8 }
   0xd   : > { %p1230_p7 = por %p50_p6, %p49_p4  ;;  %s31_s24 = ssub.s32 %s1150_s15, %s1660_s19 }
   0xe   : > { %s33_s25 = sor.u32 %s32_s21, %s31_s24  ;;  %s125_s26 = sand.u32 1, %s1134_s11  }
   0xf   : > { %p34_p9 = scmp.eq.s32.totalorder %s33_s25, 0  ;;  %s940_s27 = sshll.u32 %s125_s26, 10 }
  0x10   : > { %s952_s28 = sshll.u32 %s1146_s14, 7  ;;  %s943_s30 = sshll.u32 %s1150_s15, 9 }
  0x11   : > { %s1240_s29 = scalar_select %p34_p9, %s1134_s11, %s36_s20  }
  0x12   : > { %s135_s3 = sadd.s32 %s952_s28, %s943_s30  ;;  %s129_s4 = scalar_lea.vmem [#allocation2], %s940_s27 }
  0x13   : > { %s140_s5 = sshll.u32 %s129_s4, 4  ;;  %s944_s6 = sshll.u32 %s135_s3, 3  ;;  %s141_s5 = int_to_ptr.vmem [resolvable:$true] %s140_s5 }
  0x14   : > { %s137_s9 = scalar_lea.hbm %s1643_s0, %s944_s6  ;;  %p988_p10 = pnand %p991_p8, %p1224_p5 }
  0x15   : > { %s138_s17 = sshll.u32 %s137_s9, 4  ;;  %p945_p11 = scmp.ge.s32.totalorder %s1154_s16, 1  ;;  %s139_s17 = int_to_ptr.hbm [resolvable:$true] %s138_s17 }
  0x16   : > { %s126_s21 = scalar_lea.sflag [#allocation3], %s125_s26  ;;  %s1156_s20 = smov 256  }
  0x17   : > { %s1157_s24 = smov 16   ;;  %p148_p12 = scmp.lt.s32.totalorder %s1154_s16, 9 }
  0x18   : > { %990 = dma.hbm_to_vmem [thread:$0]  (!%p988_p10), %s139_s17, 16384, %s141_s5, %s126_s21, %s1156_s20, %s1156_s20, %s1157_s24  }
  0x19   : > { %p149_p13 = pnand %p945_p11, %p148_p12 }
  0x1a   : > { %s154_s25 = sand.u32 (!%p149_p13), 1, %s1130_s10  }
  0x1b   : > { %152 = sbr.rel (%p149_p13) target bundleno = 449 (0x1c1), region = 28  ;;  %s946_s27 = sshll.u32 (!%p149_p13), %s154_s25, 10 }
  0x1c   : > { %s155_s28 = scalar_lea.sflag (!%p149_p13), [#allocation3], %s154_s25  ;;  %s1253_s30 = scalar_lea.vmem (!%p149_p13), [#allocation2], %s946_s27 }
  0x20   : > { %1121 = dma.done.wait (%p1230_p7), %s155_s28, 16384  }
  0x21   : > { %1123 = vsyncadd (%p1230_p7), %s155_s28, 4294950912  ;;  %v338_v0 = vld [vmem:[%s1644_s1 + $0x78] sm:$0xff]  ;;  %v337_v2 = vld [vmem:[%s1644_s1 + $0x70] sm:$0xff]  ;;  %s947_s24 = sshll.u32 %s1138_s12, 6  ;;  %p186_p0 = scmp.lt.s32.totalorder %s1142_s13, 1  ;;  %vm773_vm0 = vcmask 31744  }
  0x22   : > { %v354_v1 = vld [vmem:[%s1644_s1 + $0xf8] sm:$0xff]  ;;  %953 = vmatpush.msra.mxu2 %v338_v0  ;;  %v353_v3 = vld [vmem:[%s1644_s1 + $0xf0] sm:$0xff]  ;;  %v336_v4 = vld [vmem:[%s1644_s1 + $0x68] sm:$0xff]  ;;  %355 = vmatpush.msra.mxu0 %v338_v0  ;;  %p188_p1 = scmp.lt.s32.totalorder %s947_s24, 255 }
  0x23   : > { %969 = vmatpush.msra.mxu3 %v354_v1  ;;  %v352_v5 = vld [vmem:[%s1644_s1 + $0xe8] sm:$0xff]  ;;  %564 = vmatpush.msra.mxu1 %v354_v1  ;;  %v335_v6 = vld [vmem:[%s1644_s1 + $0x60] sm:$0xff]  ;;  %v334_v8 = vld [vmem:[%s1644_s1 + $0x58] sm:$0xff]  ;;  %s1662_s13 = smov (!%p186_p0, %s1142_s13), 1 }
  0x24   : > { %954 = vmatpush.msra.mxu2 %v337_v2  ;;  %v351_v7 = vld [vmem:[%s1644_s1 + $0xe0] sm:$0xff]  ;;  %356 = vmatpush.msra.mxu0 %v337_v2  ;;  %v350_v9 = vld [vmem:[%s1644_s1 + $0xd8] sm:$0xff]  ;;  %v333_v10 = vld [vmem:[%s1644_s1 + $0x50] sm:$0xff]  ;;  %s1664_s24 = smov (!%p188_p1, %s947_s24), 255  ;;  %s948_s25 = sshll.u32 %s1662_s13, 8 }
  0x25   : > { %970 = vmatpush.msra.mxu3 %v353_v3  ;;  %565 = vmatpush.msra.mxu1 %v353_v3  ;;  %v349_v11 = vld [vmem:[%s1644_s1 + $0xd0] sm:$0xff]  ;;  %v332_v12 = vld [vmem:[%s1644_s1 + $0x48] sm:$0xff]  ;;  %v331_v14 = vld [vmem:[%s1644_s1 + $0x40] sm:$0xff]  ;;  %s191_s12 = sadd.s32 %s948_s25, %s1664_s24 }
  0x26   : > { %955 = vmatpush.msra.mxu2 %v336_v4  ;;  %357 = vmatpush.msra.mxu0 %v336_v4  ;;  %v348_v13 = vld [vmem:[%s1644_s1 + $0xc8] sm:$0xff]  ;;  %v347_v15 = vld [vmem:[%s1644_s1 + $0xc0] sm:$0xff]  ;;  %v330_v16 = vld [vmem:[%s1644_s1 + $0x38] sm:$0xff]  ;;  %s949_s27 = sshll.u32 %s191_s12, 3 }
  0x27   : > { %971 = vmatpush.msra.mxu3 %v352_v5  ;;  %566 = vmatpush.msra.mxu1 %v352_v5  ;;  %v346_v17 = vld [vmem:[%s1644_s1 + $0xb8] sm:$0xff]  ;;  %v329_v18 = vld [vmem:[%s1644_s1 + $0x30] sm:$0xff]  ;;  %v328_v20 = vld [vmem:[%s1644_s1 + $0x28] sm:$0xff]  ;;  %s1427_s26 = scalar_lea.vmem %s1645_s2, %s949_s27 }
  0x28   : > { %956 = vmatpush.msra.mxu2 %v335_v6  ;;  %358 = vmatpush.msra.mxu0 %v335_v6  ;;  %v345_v19 = vld [vmem:[%s1644_s1 + $0xb0] sm:$0xff]  ;;  %v344_v21 = vld [vmem:[%s1644_s1 + $0xa8] sm:$0xff]  ;;  %v327_v22 = vld [vmem:[%s1644_s1 + $0x20] sm:$0xff] }
  0x29   : > { %972 = vmatpush.msra.mxu3 %v351_v7  ;;  %567 = vmatpush.msra.mxu1 %v351_v7  ;;  %v343_v23 = vld [vmem:[%s1644_s1 + $0xa0] sm:$0xff]  ;;  %v326_v24 = vld [vmem:[%s1644_s1 + $0x18] sm:$0xff]  ;;  %v325_v26 = vld [vmem:[%s1644_s1 + $0x10] sm:$0xff] }
  0x2a   : > { %957 = vmatpush.msra.mxu2 %v334_v8  ;;  %359 = vmatpush.msra.mxu0 %v334_v8  ;;  %v342_v25 = vld [vmem:[%s1644_s1 + $0x98] sm:$0xff]  ;;  %v341_v27 = vld [vmem:[%s1644_s1 + $0x90] sm:$0xff]  ;;  %v324_v28 = vld [vmem:[%s1644_s1 + $0x8] sm:$0xff] }
  0x2b   : > { %973 = vmatpush.msra.mxu3 %v350_v9  ;;  %568 = vmatpush.msra.mxu1 %v350_v9  ;;  %v340_v29 = vld [vmem:[%s1644_s1 + $0x88] sm:$0xff]  ;;  %v323_v30 = vld [vmem:[%s1644_s1] sm:$0xff]  ;;  %v261_v36 = vld [vmem:[%s1253_s30 + $0x210] sm:$0xff] }
  0x2c   : > { %958 = vmatpush.msra.mxu2 %v333_v10  ;;  %360 = vmatpush.msra.mxu0 %v333_v10  ;;  %v339_v31 = vld [vmem:[%s1644_s1 + $0x80] sm:$0xff]  ;;  %v260_v33 = vld [vmem:[%s1253_s30 + $0x208] sm:$0xff]  ;;  %v262_v37 = vld [vmem:[%s1253_s30 + $0x218] sm:$0xff] }
  0x2d   : > { %974 = vmatpush.msra.mxu3 %v349_v11  ;;  %569 = vmatpush.msra.mxu1 %v349_v11  ;;  %v259_v32 = vld [vmem:[%s1253_s30 + $0x200] sm:$0xff]  ;;  %v196_v35 = vld [vmem:[%s1253_s30 + $0x8] sm:$0xff]  ;;  %v197_v38 = vld [vmem:[%s1253_s30 + $0x10] sm:$0xff] }
  0x2e   : > { %959 = vmatpush.msra.mxu2 %v332_v12  ;;  %361 = vmatpush.msra.mxu0 %v332_v12  ;;  %v195_v34 = vld [vmem:[%s1253_s30] sm:$0xff]  ;;  %v198_v39 = vld [vmem:[%s1253_s30 + $0x18] sm:$0xff]  ;;  %v264_v41 = vld [vmem:[%s1253_s30 + $0x228] sm:$0xff] }
  0x2f   : > { %975 = vmatpush.msra.mxu3 %v348_v13  ;;  %570 = vmatpush.msra.mxu1 %v348_v13  ;;  %v263_v40 = vld [vmem:[%s1253_s30 + $0x220] sm:$0xff]  ;;  %v200_v43 = vld [vmem:[%s1253_s30 + $0x28] sm:$0xff]  ;;  %v265_v44 = vld [vmem:[%s1253_s30 + $0x230] sm:$0xff] }
  0x30   : > { %960 = vmatpush.msra.mxu2 %v331_v14  ;;  %362 = vmatpush.msra.mxu0 %v331_v14  ;;  %v199_v42 = vld [vmem:[%s1253_s30 + $0x20] sm:$0xff]  ;;  %v266_v45 = vld [vmem:[%s1253_s30 + $0x238] sm:$0xff]  ;;  %v201_v46 = vld [vmem:[%s1253_s30 + $0x30] sm:$0xff] }
  0x31   : > { %976 = vmatpush.msra.mxu3 %v347_v15  ;;  %571 = vmatpush.msra.mxu1 %v347_v15  ;;  %v202_v47 = vld [vmem:[%s1253_s30 + $0x38] sm:$0xff]  ;;  %v267_v48 = vld [vmem:[%s1253_s30 + $0x240] sm:$0xff]  ;;  %v268_v49 = vld [vmem:[%s1253_s30 + $0x248] sm:$0xff] }
  0x32   : > { %961 = vmatpush.msra.mxu2 %v330_v16  ;;  %363 = vmatpush.msra.mxu0 %v330_v16  ;;  %v203_v50 = vld [vmem:[%s1253_s30 + $0x40] sm:$0xff]  ;;  %v204_v51 = vld [vmem:[%s1253_s30 + $0x48] sm:$0xff]  ;;  %v269_v52 = vld [vmem:[%s1253_s30 + $0x250] sm:$0xff] }
  0x33   : > { %977 = vmatpush.msra.mxu3 %v346_v17  ;;  %572 = vmatpush.msra.mxu1 %v346_v17  ;;  %v270_v53 = vld [vmem:[%s1253_s30 + $0x258] sm:$0xff]  ;;  %v205_v54 = vld [vmem:[%s1253_s30 + $0x50] sm:$0xff]  ;;  %v271_v56 = vld [vmem:[%s1253_s30 + $0x260] sm:$0xff] }
  0x34   : > { %962 = vmatpush.msra.mxu2 %v329_v18  ;;  %364 = vmatpush.msra.mxu0 %v329_v18  ;;  %v206_v55 = vld [vmem:[%s1253_s30 + $0x58] sm:$0xff]  ;;  %v272_v57 = vld [vmem:[%s1253_s30 + $0x268] sm:$0xff]  ;;  %v207_v58 = vld [vmem:[%s1253_s30 + $0x60] sm:$0xff] }
  0x35   : > { %978 = vmatpush.msra.mxu3 %v345_v19  ;;  %573 = vmatpush.msra.mxu1 %v345_v19  ;;  %v208_v59 = vld [vmem:[%s1253_s30 + $0x68] sm:$0xff]  ;;  %v273_v60 = vld [vmem:[%s1253_s30 + $0x270] sm:$0xff]  ;;  %v274_v61 = vld [vmem:[%s1253_s30 + $0x278] sm:$0xff] }
  0x36   : > { %963 = vmatpush.msra.mxu2 %v328_v20  ;;  %365 = vmatpush.msra.mxu0 %v328_v20  ;;  %v209_v62 = vld [vmem:[%s1253_s30 + $0x70] sm:$0xff]  ;;  %v210_v63 = vld [vmem:[%s1253_s30 + $0x78] sm:$0xff]  ;;  %v275_v0 = vld [vmem:[%s1253_s30 + $0x280] sm:$0xff] }
  0x37   : > { %979 = vmatpush.msra.mxu3 %v344_v21  ;;  %574 = vmatpush.msra.mxu1 %v344_v21  ;;  %v276_v1 = vld [vmem:[%s1253_s30 + $0x288] sm:$0xff]  ;;  %v211_v2 = vld [vmem:[%s1253_s30 + $0x80] sm:$0xff]  ;;  %v277_v4 = vld [vmem:[%s1253_s30 + $0x290] sm:$0xff] }
  0x38   : > { %964 = vmatpush.msra.mxu2 %v327_v22  ;;  %366 = vmatpush.msra.mxu0 %v327_v22  ;;  %v212_v3 = vld [vmem:[%s1253_s30 + $0x88] sm:$0xff]  ;;  %v278_v5 = vld [vmem:[%s1253_s30 + $0x298] sm:$0xff]  ;;  %v213_v6 = vld [vmem:[%s1253_s30 + $0x90] sm:$0xff] }
  0x39   : > { %980 = vmatpush.msra.mxu3 %v343_v23  ;;  %575 = vmatpush.msra.mxu1 %v343_v23  ;;  %v214_v7 = vld [vmem:[%s1253_s30 + $0x98] sm:$0xff]  ;;  %v279_v8 = vld [vmem:[%s1253_s30 + $0x2a0] sm:$0xff]  ;;  %v280_v9 = vld [vmem:[%s1253_s30 + $0x2a8] sm:$0xff] }
  0x3a   : > { %965 = vmatpush.msra.mxu2 %v326_v24  ;;  %367 = vmatpush.msra.mxu0 %v326_v24  ;;  %v215_v10 = vld [vmem:[%s1253_s30 + $0xa0] sm:$0xff]  ;;  %v216_v11 = vld [vmem:[%s1253_s30 + $0xa8] sm:$0xff]  ;;  %v281_v12 = vld [vmem:[%s1253_s30 + $0x2b0] sm:$0xff] }
  0x3b   : > { %981 = vmatpush.msra.mxu3 %v342_v25  ;;  %576 = vmatpush.msra.mxu1 %v342_v25  ;;  %v282_v13 = vld [vmem:[%s1253_s30 + $0x2b8] sm:$0xff]  ;;  %v217_v14 = vld [vmem:[%s1253_s30 + $0xb0] sm:$0xff]  ;;  %v283_v16 = vld [vmem:[%s1253_s30 + $0x2c0] sm:$0xff] }
  0x3c   : > { %966 = vmatpush.msra.mxu2 %v325_v26  ;;  %368 = vmatpush.msra.mxu0 %v325_v26  ;;  %v218_v15 = vld [vmem:[%s1253_s30 + $0xb8] sm:$0xff]  ;;  %v284_v17 = vld [vmem:[%s1253_s30 + $0x2c8] sm:$0xff]  ;;  %v219_v18 = vld [vmem:[%s1253_s30 + $0xc0] sm:$0xff] }
  0x3d   : > { %982 = vmatpush.msra.mxu3 %v341_v27  ;;  %577 = vmatpush.msra.mxu1 %v341_v27  ;;  %v220_v19 = vld [vmem:[%s1253_s30 + $0xc8] sm:$0xff]  ;;  %v285_v20 = vld [vmem:[%s1253_s30 + $0x2d0] sm:$0xff]  ;;  %v286_v21 = vld [vmem:[%s1253_s30 + $0x2d8] sm:$0xff] }
  0x3e   : > { %967 = vmatpush.msra.mxu2 %v324_v28  ;;  %369 = vmatpush.msra.mxu0 %v324_v28  ;;  %v221_v22 = vld [vmem:[%s1253_s30 + $0xd0] sm:$0xff]  ;;  %v222_v23 = vld [vmem:[%s1253_s30 + $0xd8] sm:$0xff]  ;;  %v287_v24 = vld [vmem:[%s1253_s30 + $0x2e0] sm:$0xff] }
  0x3f   : > { %983 = vmatpush.msra.mxu3 %v340_v29  ;;  %578 = vmatpush.msra.mxu1 %v340_v29  ;;  %v288_v25 = vld [vmem:[%s1253_s30 + $0x2e8] sm:$0xff]  ;;  %v223_v26 = vld [vmem:[%s1253_s30 + $0xe0] sm:$0xff]  ;;  %v289_v28 = vld [vmem:[%s1253_s30 + $0x2f0] sm:$0xff] }
  0x40   : > { %968 = vmatpush.msra.mxu2 %v323_v30  ;;  %370 = vmatpush.msra.mxu0 %v323_v30  ;;  %v224_v27 = vld [vmem:[%s1253_s30 + $0xe8] sm:$0xff]  ;;  %v290_v29 = vld [vmem:[%s1253_s30 + $0x2f8] sm:$0xff]  ;;  %v225_v30 = vld [vmem:[%s1253_s30 + $0xf0] sm:$0xff] }
  0x41   : > { %984 = vmatpush.msra.mxu3 %v339_v31  ;;  %467 = vmatmul.f32.vlgmr.msra.gmra.mxu2 %v259_v32  ;;  %v291_v32 = vld [vmem:[%s1253_s30 + $0x300] sm:$0xff] }
  0x42   : > { %676 = vmatmul.f32.vlgmr.msra.gmra.mxu3 %v260_v33  ;;  %579 = vmatpush.msra.mxu1 %v339_v31  ;;  %v226_v31 = vld [vmem:[%s1253_s30 + $0xf8] sm:$0xff]  ;;  %v292_v33 = vld [vmem:[%s1253_s30 + $0x308] sm:$0xff] }
  0x43   : > { %371 = vmatmul.f32.vlgmr.msra.gmra.mxu0 %v195_v34  ;;  %580 = vmatmul.f32.vlgmr.msra.gmra.mxu1 %v196_v35 }
  0x49   : > { %470 = vmatmul.f32.gmra.mxu2 %v261_v36  ;;  %v227_v36 = vld [vmem:[%s1253_s30 + $0x100] sm:$0xff] }
  0x4a   : > { %679 = vmatmul.f32.gmra.mxu3 %v262_v37  ;;  %v228_v37 = vld [vmem:[%s1253_s30 + $0x108] sm:$0xff] }
  0x4b   : > { %374 = vmatmul.f32.gmra.mxu0 %v197_v38  ;;  %583 = vmatmul.f32.gmra.mxu1 %v198_v39 }
  0x51   : > { %473 = vmatmul.f32.gmra.mxu2 %v263_v40 }
  0x52   : > { %682 = vmatmul.f32.gmra.mxu3 %v264_v41 }
  0x53   : > { %377 = vmatmul.f32.gmra.mxu0 %v199_v42  ;;  %586 = vmatmul.f32.gmra.mxu1 %v200_v43  ;;  %v293_v42 = vld [vmem:[%s1253_s30 + $0x310] sm:$0xff]  ;;  %v294_v43 = vld [vmem:[%s1253_s30 + $0x318] sm:$0xff] }
  0x59   : > { %476 = vmatmul.f32.gmra.mxu2 %v265_v44 }
  0x5a   : > { %685 = vmatmul.f32.gmra.mxu3 %v266_v45 }
  0x5b   : > { %380 = vmatmul.f32.gmra.mxu0 %v201_v46  ;;  %589 = vmatmul.f32.gmra.mxu1 %v202_v47  ;;  %v229_v46 = vld [vmem:[%s1253_s30 + $0x110] sm:$0xff]  ;;  %v230_v47 = vld [vmem:[%s1253_s30 + $0x118] sm:$0xff] }
  0x61   : > { %479 = vmatmul.f32.gmra.mxu2 %v267_v48 }
  0x62   : > { %688 = vmatmul.f32.gmra.mxu3 %v268_v49 }
  0x63   : > { %383 = vmatmul.f32.gmra.mxu0 %v203_v50  ;;  %592 = vmatmul.f32.gmra.mxu1 %v204_v51 }
  0x69   : > { %482 = vmatmul.f32.gmra.mxu2 %v269_v52  ;;  %v295_v52 = vld [vmem:[%s1253_s30 + $0x320] sm:$0xff] }
  0x6a   : > { %691 = vmatmul.f32.gmra.mxu3 %v270_v53  ;;  %v296_v53 = vld [vmem:[%s1253_s30 + $0x328] sm:$0xff] }
  0x6b   : > { %386 = vmatmul.f32.gmra.mxu0 %v205_v54  ;;  %595 = vmatmul.f32.gmra.mxu1 %v206_v55 }
  0x71   : > { %485 = vmatmul.f32.gmra.mxu2 %v271_v56  ;;  %v231_v56 = vld [vmem:[%s1253_s30 + $0x120] sm:$0xff] }
  0x72   : > { %694 = vmatmul.f32.gmra.mxu3 %v272_v57  ;;  %v232_v57 = vld [vmem:[%s1253_s30 + $0x128] sm:$0xff] }
  0x73   : > { %389 = vmatmul.f32.gmra.mxu0 %v207_v58  ;;  %598 = vmatmul.f32.gmra.mxu1 %v208_v59 }
  0x79   : > { %488 = vmatmul.f32.gmra.mxu2 %v273_v60 }
  0x7a   : > { %697 = vmatmul.f32.gmra.mxu3 %v274_v61 }
  0x7b   : > { %392 = vmatmul.f32.gmra.mxu0 %v209_v62  ;;  %601 = vmatmul.f32.gmra.mxu1 %v210_v63  ;;  %v297_v62 = vld [vmem:[%s1253_s30 + $0x330] sm:$0xff]  ;;  %v298_v63 = vld [vmem:[%s1253_s30 + $0x338] sm:$0xff] }
  0x81   : > { %491 = vmatmul.f32.gmra.mxu2 %v275_v0 }
  0x82   : > { %700 = vmatmul.f32.gmra.mxu3 %v276_v1 }
  0x83   : > { %395 = vmatmul.f32.gmra.mxu0 %v211_v2  ;;  %604 = vmatmul.f32.gmra.mxu1 %v212_v3  ;;  %v233_v2 = vld [vmem:[%s1253_s30 + $0x130] sm:$0xff]  ;;  %v234_v3 = vld [vmem:[%s1253_s30 + $0x138] sm:$0xff] }
  0x89   : > { %494 = vmatmul.f32.gmra.mxu2 %v277_v4 }
  0x8a   : > { %703 = vmatmul.f32.gmra.mxu3 %v278_v5 }
  0x8b   : > { %398 = vmatmul.f32.gmra.mxu0 %v213_v6  ;;  %607 = vmatmul.f32.gmra.mxu1 %v214_v7 }
  0x91   : > { %497 = vmatmul.f32.gmra.mxu2 %v279_v8  ;;  %v299_v8 = vld [vmem:[%s1253_s30 + $0x340] sm:$0xff] }
  0x92   : > { %706 = vmatmul.f32.gmra.mxu3 %v280_v9  ;;  %v300_v9 = vld [vmem:[%s1253_s30 + $0x348] sm:$0xff] }
  0x93   : > { %401 = vmatmul.f32.gmra.mxu0 %v215_v10  ;;  %610 = vmatmul.f32.gmra.mxu1 %v216_v11 }
  0x99   : > { %500 = vmatmul.f32.gmra.mxu2 %v281_v12  ;;  %v235_v12 = vld [vmem:[%s1253_s30 + $0x140] sm:$0xff] }
  0x9a   : > { %709 = vmatmul.f32.gmra.mxu3 %v282_v13  ;;  %v236_v13 = vld [vmem:[%s1253_s30 + $0x148] sm:$0xff] }
  0x9b   : > { %404 = vmatmul.f32.gmra.mxu0 %v217_v14  ;;  %613 = vmatmul.f32.gmra.mxu1 %v218_v15 }
  0xa1   : > { %503 = vmatmul.f32.gmra.mxu2 %v283_v16 }
  0xa2   : > { %712 = vmatmul.f32.gmra.mxu3 %v284_v17 }
  0xa3   : > { %407 = vmatmul.f32.gmra.mxu0 %v219_v18  ;;  %616 = vmatmul.f32.gmra.mxu1 %v220_v19  ;;  %v301_v18 = vld [vmem:[%s1253_s30 + $0x350] sm:$0xff]  ;;  %v302_v19 = vld [vmem:[%s1253_s30 + $0x358] sm:$0xff] }
  0xa9   : > { %506 = vmatmul.f32.gmra.mxu2 %v285_v20 }
  0xaa   : > { %715 = vmatmul.f32.gmra.mxu3 %v286_v21 }
  0xab   : > { %410 = vmatmul.f32.gmra.mxu0 %v221_v22  ;;  %619 = vmatmul.f32.gmra.mxu1 %v222_v23  ;;  %v237_v22 = vld [vmem:[%s1253_s30 + $0x150] sm:$0xff]  ;;  %v238_v23 = vld [vmem:[%s1253_s30 + $0x158] sm:$0xff] }
  0xb1   : > { %509 = vmatmul.f32.gmra.mxu2 %v287_v24 }
  0xb2   : > { %718 = vmatmul.f32.gmra.mxu3 %v288_v25 }
  0xb3   : > { %413 = vmatmul.f32.gmra.mxu0 %v223_v26  ;;  %622 = vmatmul.f32.gmra.mxu1 %v224_v27 }
  0xb9   : > { %512 = vmatmul.f32.gmra.mxu2 %v289_v28  ;;  %v303_v28 = vld [vmem:[%s1253_s30 + $0x360] sm:$0xff] }
  0xba   : > { %721 = vmatmul.f32.gmra.mxu3 %v290_v29  ;;  %v304_v29 = vld [vmem:[%s1253_s30 + $0x368] sm:$0xff] }
  0xbb   : > { %416 = vmatmul.f32.gmra.mxu0 %v225_v30  ;;  %625 = vmatmul.f32.gmra.mxu1 %v226_v31 }
  0xc0   : > { %v372_v34 = vpop.f32.mrf.mxu0  ;;  %v581_v35 = vpop.f32.mrf.mxu1 }
  0xc1   : > { %515 = vmatmul.f32.gmra.mxu2 %v291_v32  ;;  %v582_v38 = vadd.f32 %v581_v35, %v372_v34  ;;  %v239_v32 = vld [vmem:[%s1253_s30 + $0x160] sm:$0xff] }
  0xc2   : > { %724 = vmatmul.f32.gmra.mxu3 %v292_v33  ;;  %v240_v33 = vld [vmem:[%s1253_s30 + $0x168] sm:$0xff] }
  0xc3   : > { %774 = vst.msk [vmem:[%s1427_s26] sm:$0xff] %vm773_vm0, %v582_v38  ;;  %419 = vmatmul.f32.gmra.mxu0 %v227_v36  ;;  %628 = vmatmul.f32.gmra.mxu1 %v228_v37  ;;  %v305_v38 = vld [vmem:[%s1253_s30 + $0x370] sm:$0xff] }
  0xc4   : > { %v468_v39 = vpop.f32.mrf.mxu2 }
  0xc5   : > { %v677_v40 = vpop.f32.mrf.mxu3 }
  0xc6   : > { %v678_v41 = vadd.f32 %v677_v40, %v468_v39  ;;  %v306_v39 = vld [vmem:[%s1253_s30 + $0x378] sm:$0xff] }
  0xc8   : > { %806 = vst.msk [vmem:[%s1427_s26 + $0x100] sm:$0xff] %vm773_vm0, %v678_v41  ;;  %v375_v44 = vpop.f32.mrf.mxu0  ;;  %v584_v45 = vpop.f32.mrf.mxu1 }
  0xc9   : > { %518 = vmatmul.f32.gmra.mxu2 %v293_v42  ;;  %v585_v48 = vadd.f32 %v584_v45, %v375_v44  ;;  %v241_v42 = vld [vmem:[%s1253_s30 + $0x170] sm:$0xff] }
  0xca   : > { %727 = vmatmul.f32.gmra.mxu3 %v294_v43  ;;  %v242_v43 = vld [vmem:[%s1253_s30 + $0x178] sm:$0xff] }
  0xcb   : > { %775 = vst.msk [vmem:[%s1427_s26 + $0x8] sm:$0xff] %vm773_vm0, %v585_v48  ;;  %422 = vmatmul.f32.gmra.mxu0 %v229_v46  ;;  %631 = vmatmul.f32.gmra.mxu1 %v230_v47  ;;  %v307_v48 = vld [vmem:[%s1253_s30 + $0x380] sm:$0xff] }
  0xcc   : > { %v471_v49 = vpop.f32.mrf.mxu2 }
  0xcd   : > { %v680_v50 = vpop.f32.mrf.mxu3 }
  0xce   : > { %v681_v51 = vadd.f32 %v680_v50, %v471_v49  ;;  %v308_v49 = vld [vmem:[%s1253_s30 + $0x388] sm:$0xff] }
  0xd0   : > { %807 = vst.msk [vmem:[%s1427_s26 + $0x108] sm:$0xff] %vm773_vm0, %v681_v51  ;;  %v378_v54 = vpop.f32.mrf.mxu0  ;;  %v587_v55 = vpop.f32.mrf.mxu1 }
  0xd1   : > { %521 = vmatmul.f32.gmra.mxu2 %v295_v52  ;;  %v588_v58 = vadd.f32 %v587_v55, %v378_v54  ;;  %v243_v52 = vld [vmem:[%s1253_s30 + $0x180] sm:$0xff] }
  0xd2   : > { %730 = vmatmul.f32.gmra.mxu3 %v296_v53  ;;  %v244_v53 = vld [vmem:[%s1253_s30 + $0x188] sm:$0xff] }
  0xd3   : > { %776 = vst.msk [vmem:[%s1427_s26 + $0x10] sm:$0xff] %vm773_vm0, %v588_v58  ;;  %425 = vmatmul.f32.gmra.mxu0 %v231_v56  ;;  %634 = vmatmul.f32.gmra.mxu1 %v232_v57  ;;  %v309_v58 = vld [vmem:[%s1253_s30 + $0x390] sm:$0xff] }
  0xd4   : > { %v474_v59 = vpop.f32.mrf.mxu2 }
  0xd5   : > { %v683_v60 = vpop.f32.mrf.mxu3 }
  0xd6   : > { %v684_v61 = vadd.f32 %v683_v60, %v474_v59  ;;  %v310_v59 = vld [vmem:[%s1253_s30 + $0x398] sm:$0xff] }
  0xd8   : > { %808 = vst.msk [vmem:[%s1427_s26 + $0x110] sm:$0xff] %vm773_vm0, %v684_v61  ;;  %v381_v0 = vpop.f32.mrf.mxu0  ;;  %v590_v1 = vpop.f32.mrf.mxu1 }
  0xd9   : > { %524 = vmatmul.f32.gmra.mxu2 %v297_v62  ;;  %v591_v4 = vadd.f32 %v590_v1, %v381_v0  ;;  %v245_v62 = vld [vmem:[%s1253_s30 + $0x190] sm:$0xff] }
  0xda   : > { %733 = vmatmul.f32.gmra.mxu3 %v298_v63  ;;  %v246_v63 = vld [vmem:[%s1253_s30 + $0x198] sm:$0xff] }
  0xdb   : > { %777 = vst.msk [vmem:[%s1427_s26 + $0x18] sm:$0xff] %vm773_vm0, %v591_v4  ;;  %428 = vmatmul.f32.gmra.mxu0 %v233_v2  ;;  %637 = vmatmul.f32.gmra.mxu1 %v234_v3  ;;  %v311_v4 = vld [vmem:[%s1253_s30 + $0x3a0] sm:$0xff] }
  0xdc   : > { %v477_v5 = vpop.f32.mrf.mxu2 }
  0xdd   : > { %v686_v6 = vpop.f32.mrf.mxu3 }
  0xde   : > { %v687_v7 = vadd.f32 %v686_v6, %v477_v5  ;;  %v312_v5 = vld [vmem:[%s1253_s30 + $0x3a8] sm:$0xff] }
  0xe0   : > { %809 = vst.msk [vmem:[%s1427_s26 + $0x118] sm:$0xff] %vm773_vm0, %v687_v7  ;;  %v384_v10 = vpop.f32.mrf.mxu0  ;;  %v593_v11 = vpop.f32.mrf.mxu1 }
  0xe1   : > { %527 = vmatmul.f32.gmra.mxu2 %v299_v8  ;;  %v594_v14 = vadd.f32 %v593_v11, %v384_v10  ;;  %v247_v8 = vld [vmem:[%s1253_s30 + $0x1a0] sm:$0xff] }
  0xe2   : > { %736 = vmatmul.f32.gmra.mxu3 %v300_v9  ;;  %v248_v9 = vld [vmem:[%s1253_s30 + $0x1a8] sm:$0xff] }
  0xe3   : > { %778 = vst.msk [vmem:[%s1427_s26 + $0x20] sm:$0xff] %vm773_vm0, %v594_v14  ;;  %431 = vmatmul.f32.gmra.mxu0 %v235_v12  ;;  %640 = vmatmul.f32.gmra.mxu1 %v236_v13  ;;  %v313_v14 = vld [vmem:[%s1253_s30 + $0x3b0] sm:$0xff] }
  0xe4   : > { %v480_v15 = vpop.f32.mrf.mxu2 }
  0xe5   : > { %v689_v16 = vpop.f32.mrf.mxu3 }
  0xe6   : > { %v690_v17 = vadd.f32 %v689_v16, %v480_v15  ;;  %v314_v15 = vld [vmem:[%s1253_s30 + $0x3b8] sm:$0xff] }
  0xe8   : > { %810 = vst.msk [vmem:[%s1427_s26 + $0x120] sm:$0xff] %vm773_vm0, %v690_v17  ;;  %v387_v20 = vpop.f32.mrf.mxu0  ;;  %v596_v21 = vpop.f32.mrf.mxu1 }
  0xe9   : > { %530 = vmatmul.f32.gmra.mxu2 %v301_v18  ;;  %v597_v24 = vadd.f32 %v596_v21, %v387_v20  ;;  %v249_v18 = vld [vmem:[%s1253_s30 + $0x1b0] sm:$0xff] }
  0xea   : > { %739 = vmatmul.f32.gmra.mxu3 %v302_v19  ;;  %v250_v19 = vld [vmem:[%s1253_s30 + $0x1b8] sm:$0xff] }
  0xeb   : > { %779 = vst.msk [vmem:[%s1427_s26 + $0x28] sm:$0xff] %vm773_vm0, %v597_v24  ;;  %434 = vmatmul.f32.gmra.mxu0 %v237_v22  ;;  %643 = vmatmul.f32.gmra.mxu1 %v238_v23  ;;  %v315_v24 = vld [vmem:[%s1253_s30 + $0x3c0] sm:$0xff] }
  0xec   : > { %v483_v25 = vpop.f32.mrf.mxu2 }
  0xed   : > { %v692_v26 = vpop.f32.mrf.mxu3 }
  0xee   : > { %v693_v27 = vadd.f32 %v692_v26, %v483_v25  ;;  %v316_v25 = vld [vmem:[%s1253_s30 + $0x3c8] sm:$0xff] }
  0xf0   : > { %811 = vst.msk [vmem:[%s1427_s26 + $0x128] sm:$0xff] %vm773_vm0, %v693_v27  ;;  %v390_v30 = vpop.f32.mrf.mxu0  ;;  %v599_v31 = vpop.f32.mrf.mxu1 }
  0xf1   : > { %533 = vmatmul.f32.gmra.mxu2 %v303_v28  ;;  %v600_v34 = vadd.f32 %v599_v31, %v390_v30  ;;  %v251_v28 = vld [vmem:[%s1253_s30 + $0x1c0] sm:$0xff] }
  0xf2   : > { %742 = vmatmul.f32.gmra.mxu3 %v304_v29  ;;  %v252_v29 = vld [vmem:[%s1253_s30 + $0x1c8] sm:$0xff] }
  0xf3   : > { %780 = vst.msk [vmem:[%s1427_s26 + $0x30] sm:$0xff] %vm773_vm0, %v600_v34  ;;  %437 = vmatmul.f32.gmra.mxu0 %v239_v32  ;;  %646 = vmatmul.f32.gmra.mxu1 %v240_v33  ;;  %v317_v34 = vld [vmem:[%s1253_s30 + $0x3d0] sm:$0xff] }
  0xf4   : > { %v486_v35 = vpop.f32.mrf.mxu2 }
  0xf5   : > { %v695_v36 = vpop.f32.mrf.mxu3 }
  0xf6   : > { %v696_v37 = vadd.f32 %v695_v36, %v486_v35  ;;  %v318_v35 = vld [vmem:[%s1253_s30 + $0x3d8] sm:$0xff] }
  0xf8   : > { %812 = vst.msk [vmem:[%s1427_s26 + $0x130] sm:$0xff] %vm773_vm0, %v696_v37  ;;  %v393_v40 = vpop.f32.mrf.mxu0  ;;  %v602_v41 = vpop.f32.mrf.mxu1 }
  0xf9   : > { %536 = vmatmul.f32.gmra.mxu2 %v305_v38  ;;  %v603_v44 = vadd.f32 %v602_v41, %v393_v40  ;;  %v253_v38 = vld [vmem:[%s1253_s30 + $0x1d0] sm:$0xff] }
  0xfa   : > { %745 = vmatmul.f32.gmra.mxu3 %v306_v39  ;;  %v254_v39 = vld [vmem:[%s1253_s30 + $0x1d8] sm:$0xff] }
  0xfb   : > { %781 = vst.msk [vmem:[%s1427_s26 + $0x38] sm:$0xff] %vm773_vm0, %v603_v44  ;;  %440 = vmatmul.f32.gmra.mxu0 %v241_v42  ;;  %649 = vmatmul.f32.gmra.mxu1 %v242_v43  ;;  %v319_v44 = vld [vmem:[%s1253_s30 + $0x3e0] sm:$0xff] }
  0xfc   : > { %v489_v45 = vpop.f32.mrf.mxu2 }
  0xfd   : > { %v698_v46 = vpop.f32.mrf.mxu3 }
  0xfe   : > { %v699_v47 = vadd.f32 %v698_v46, %v489_v45  ;;  %v320_v45 = vld [vmem:[%s1253_s30 + $0x3e8] sm:$0xff] }
 0x100   : > { %813 = vst.msk [vmem:[%s1427_s26 + $0x138] sm:$0xff] %vm773_vm0, %v699_v47  ;;  %v396_v50 = vpop.f32.mrf.mxu0  ;;  %v605_v51 = vpop.f32.mrf.mxu1 }
 0x101   : > { %539 = vmatmul.f32.gmra.mxu2 %v307_v48  ;;  %v606_v54 = vadd.f32 %v605_v51, %v396_v50  ;;  %v255_v48 = vld [vmem:[%s1253_s30 + $0x1e0] sm:$0xff] }
 0x102   : > { %748 = vmatmul.f32.gmra.mxu3 %v308_v49  ;;  %v256_v49 = vld [vmem:[%s1253_s30 + $0x1e8] sm:$0xff] }
 0x103   : > { %782 = vst.msk [vmem:[%s1427_s26 + $0x40] sm:$0xff] %vm773_vm0, %v606_v54  ;;  %443 = vmatmul.f32.gmra.mxu0 %v243_v52  ;;  %652 = vmatmul.f32.gmra.mxu1 %v244_v53  ;;  %v321_v54 = vld [vmem:[%s1253_s30 + $0x3f0] sm:$0xff] }
 0x104   : > { %v492_v55 = vpop.f32.mrf.mxu2 }
 0x105   : > { %v701_v56 = vpop.f32.mrf.mxu3 }
 0x106   : > { %v702_v57 = vadd.f32 %v701_v56, %v492_v55  ;;  %v322_v55 = vld [vmem:[%s1253_s30 + $0x3f8] sm:$0xff] }
 0x108   : > { %814 = vst.msk [vmem:[%s1427_s26 + $0x140] sm:$0xff] %vm773_vm0, %v702_v57  ;;  %v399_v60 = vpop.f32.mrf.mxu0  ;;  %v608_v61 = vpop.f32.mrf.mxu1 }
 0x109   : > { %542 = vmatmul.f32.gmra.mxu2 %v309_v58  ;;  %v609_v0 = vadd.f32 %v608_v61, %v399_v60  ;;  %v257_v58 = vld [vmem:[%s1253_s30 + $0x1f0] sm:$0xff] }
 0x10a   : > { %751 = vmatmul.f32.gmra.mxu3 %v310_v59  ;;  %v258_v59 = vld [vmem:[%s1253_s30 + $0x1f8] sm:$0xff] }
 0x10b   : > { %783 = vst.msk [vmem:[%s1427_s26 + $0x48] sm:$0xff] %vm773_vm0, %v609_v0  ;;  %446 = vmatmul.f32.gmra.mxu0 %v245_v62  ;;  %655 = vmatmul.f32.gmra.mxu1 %v246_v63 }
 0x10c   : > { %v495_v1 = vpop.f32.mrf.mxu2 }
 0x10d   : > { %v704_v2 = vpop.f32.mrf.mxu3 }
 0x10e   : > { %v705_v3 = vadd.f32 %v704_v2, %v495_v1 }
 0x110   : > { %815 = vst.msk [vmem:[%s1427_s26 + $0x148] sm:$0xff] %vm773_vm0, %v705_v3  ;;  %v402_v6 = vpop.f32.mrf.mxu0  ;;  %v611_v7 = vpop.f32.mrf.mxu1 }
 0x111   : > { %545 = vmatmul.f32.gmra.mxu2 %v311_v4  ;;  %v612_v10 = vadd.f32 %v611_v7, %v402_v6 }
 0x112   : > { %754 = vmatmul.f32.gmra.mxu3 %v312_v5 }
 0x113   : > { %784 = vst.msk [vmem:[%s1427_s26 + $0x50] sm:$0xff] %vm773_vm0, %v612_v10  ;;  %449 = vmatmul.f32.gmra.mxu0 %v247_v8  ;;  %658 = vmatmul.f32.gmra.mxu1 %v248_v9 }
 0x114   : > { %v498_v11 = vpop.f32.mrf.mxu2 }
 0x115   : > { %v707_v12 = vpop.f32.mrf.mxu3 }
 0x116   : > { %v708_v13 = vadd.f32 %v707_v12, %v498_v11 }
 0x118   : > { %816 = vst.msk [vmem:[%s1427_s26 + $0x150] sm:$0xff] %vm773_vm0, %v708_v13  ;;  %v405_v16 = vpop.f32.mrf.mxu0  ;;  %v614_v17 = vpop.f32.mrf.mxu1 }
 0x119   : > { %548 = vmatmul.f32.gmra.mxu2 %v313_v14  ;;  %v615_v20 = vadd.f32 %v614_v17, %v405_v16 }
 0x11a   : > { %757 = vmatmul.f32.gmra.mxu3 %v314_v15 }
 0x11b   : > { %785 = vst.msk [vmem:[%s1427_s26 + $0x58] sm:$0xff] %vm773_vm0, %v615_v20  ;;  %452 = vmatmul.f32.gmra.mxu0 %v249_v18  ;;  %661 = vmatmul.f32.gmra.mxu1 %v250_v19 }
 0x11c   : > { %v501_v21 = vpop.f32.mrf.mxu2 }
 0x11d   : > { %v710_v22 = vpop.f32.mrf.mxu3 }
 0x11e   : > { %v711_v23 = vadd.f32 %v710_v22, %v501_v21 }
 0x120   : > { %817 = vst.msk [vmem:[%s1427_s26 + $0x158] sm:$0xff] %vm773_vm0, %v711_v23  ;;  %v408_v26 = vpop.f32.mrf.mxu0  ;;  %v617_v27 = vpop.f32.mrf.mxu1 }
 0x121   : > { %551 = vmatmul.f32.gmra.mxu2 %v315_v24  ;;  %v618_v30 = vadd.f32 %v617_v27, %v408_v26 }
 0x122   : > { %760 = vmatmul.f32.gmra.mxu3 %v316_v25 }
 0x123   : > { %786 = vst.msk [vmem:[%s1427_s26 + $0x60] sm:$0xff] %vm773_vm0, %v618_v30  ;;  %455 = vmatmul.f32.gmra.mxu0 %v251_v28  ;;  %664 = vmatmul.f32.gmra.mxu1 %v252_v29 }
 0x124   : > { %v504_v31 = vpop.f32.mrf.mxu2 }
 0x125   : > { %v713_v32 = vpop.f32.mrf.mxu3 }
 0x126   : > { %v714_v33 = vadd.f32 %v713_v32, %v504_v31 }
 0x128   : > { %818 = vst.msk [vmem:[%s1427_s26 + $0x160] sm:$0xff] %vm773_vm0, %v714_v33  ;;  %v411_v36 = vpop.f32.mrf.mxu0  ;;  %v620_v37 = vpop.f32.mrf.mxu1 }
 0x129   : > { %554 = vmatmul.f32.gmra.mxu2 %v317_v34  ;;  %v621_v40 = vadd.f32 %v620_v37, %v411_v36 }
 0x12a   : > { %763 = vmatmul.f32.gmra.mxu3 %v318_v35 }
 0x12b   : > { %787 = vst.msk [vmem:[%s1427_s26 + $0x68] sm:$0xff] %vm773_vm0, %v621_v40  ;;  %458 = vmatmul.f32.gmra.mxu0 %v253_v38  ;;  %667 = vmatmul.f32.gmra.mxu1 %v254_v39 }
 0x12c   : > { %v507_v41 = vpop.f32.mrf.mxu2 }
 0x12d   : > { %v716_v42 = vpop.f32.mrf.mxu3 }
 0x12e   : > { %v717_v43 = vadd.f32 %v716_v42, %v507_v41 }
 0x130   : > { %819 = vst.msk [vmem:[%s1427_s26 + $0x168] sm:$0xff] %vm773_vm0, %v717_v43  ;;  %v414_v46 = vpop.f32.mrf.mxu0  ;;  %v623_v47 = vpop.f32.mrf.mxu1 }
 0x131   : > { %557 = vmatmul.f32.gmra.mxu2 %v319_v44  ;;  %v624_v50 = vadd.f32 %v623_v47, %v414_v46 }
 0x132   : > { %766 = vmatmul.f32.gmra.mxu3 %v320_v45 }
 0x133   : > { %788 = vst.msk [vmem:[%s1427_s26 + $0x70] sm:$0xff] %vm773_vm0, %v624_v50  ;;  %461 = vmatmul.f32.gmra.mxu0 %v255_v48  ;;  %670 = vmatmul.f32.gmra.mxu1 %v256_v49 }
 0x134   : > { %v510_v51 = vpop.f32.mrf.mxu2 }
 0x135   : > { %v719_v52 = vpop.f32.mrf.mxu3 }
 0x136   : > { %v720_v53 = vadd.f32 %v719_v52, %v510_v51 }
 0x138   : > { %820 = vst.msk [vmem:[%s1427_s26 + $0x170] sm:$0xff] %vm773_vm0, %v720_v53  ;;  %v417_v56 = vpop.f32.mrf.mxu0  ;;  %v626_v57 = vpop.f32.mrf.mxu1 }
 0x139   : > { %560 = vmatmul.f32.gmra.mxu2 %v321_v54  ;;  %v627_v60 = vadd.f32 %v626_v57, %v417_v56 }
 0x13a   : > { %769 = vmatmul.f32.gmra.mxu3 %v322_v55 }
 0x13b   : > { %789 = vst.msk [vmem:[%s1427_s26 + $0x78] sm:$0xff] %vm773_vm0, %v627_v60  ;;  %464 = vmatmul.f32.gmra.mxu0 %v257_v58  ;;  %673 = vmatmul.f32.gmra.mxu1 %v258_v59 }
 0x13c   : > { %v513_v61 = vpop.f32.mrf.mxu2 }
 0x13d   : > { %v722_v62 = vpop.f32.mrf.mxu3 }
 0x13e   : > { %v723_v63 = vadd.f32 %v722_v62, %v513_v61 }
 0x140   : > { %821 = vst.msk [vmem:[%s1427_s26 + $0x178] sm:$0xff] %vm773_vm0, %v723_v63  ;;  %v420_v0 = vpop.f32.mrf.mxu0  ;;  %v629_v1 = vpop.f32.mrf.mxu1 }
 0x141   : > { %v630_v2 = vadd.f32 %v629_v1, %v420_v0 }
 0x143   : > { %790 = vst.msk [vmem:[%s1427_s26 + $0x80] sm:$0xff] %vm773_vm0, %v630_v2 }
 0x144   : > { %v516_v3 = vpop.f32.mrf.mxu2 }
 0x145   : > { %v725_v4 = vpop.f32.mrf.mxu3 }
 0x146   : > { %v726_v5 = vadd.f32 %v725_v4, %v516_v3 }
 0x148   : > { %822 = vst.msk [vmem:[%s1427_s26 + $0x180] sm:$0xff] %vm773_vm0, %v726_v5  ;;  %v423_v6 = vpop.f32.mrf.mxu0  ;;  %v632_v7 = vpop.f32.mrf.mxu1 }
 0x149   : > { %v633_v8 = vadd.f32 %v632_v7, %v423_v6 }
 0x14b   : > { %791 = vst.msk [vmem:[%s1427_s26 + $0x88] sm:$0xff] %vm773_vm0, %v633_v8 }
 0x14c   : > { %v519_v9 = vpop.f32.mrf.mxu2 }
 0x14d   : > { %v728_v10 = vpop.f32.mrf.mxu3 }
 0x14e   : > { %v729_v11 = vadd.f32 %v728_v10, %v519_v9 }
 0x150   : > { %823 = vst.msk [vmem:[%s1427_s26 + $0x188] sm:$0xff] %vm773_vm0, %v729_v11  ;;  %v426_v12 = vpop.f32.mrf.mxu0  ;;  %v635_v13 = vpop.f32.mrf.mxu1 }
 0x151   : > { %v636_v14 = vadd.f32 %v635_v13, %v426_v12 }
 0x153   : > { %792 = vst.msk [vmem:[%s1427_s26 + $0x90] sm:$0xff] %vm773_vm0, %v636_v14 }
 0x154   : > { %v522_v15 = vpop.f32.mrf.mxu2 }
 0x155   : > { %v731_v16 = vpop.f32.mrf.mxu3 }
 0x156   : > { %v732_v17 = vadd.f32 %v731_v16, %v522_v15 }
 0x158   : > { %824 = vst.msk [vmem:[%s1427_s26 + $0x190] sm:$0xff] %vm773_vm0, %v732_v17  ;;  %v429_v18 = vpop.f32.mrf.mxu0  ;;  %v638_v19 = vpop.f32.mrf.mxu1 }
 0x159   : > { %v639_v20 = vadd.f32 %v638_v19, %v429_v18 }
 0x15b   : > { %793 = vst.msk [vmem:[%s1427_s26 + $0x98] sm:$0xff] %vm773_vm0, %v639_v20 }
 0x15c   : > { %v525_v21 = vpop.f32.mrf.mxu2 }
 0x15d   : > { %v734_v22 = vpop.f32.mrf.mxu3 }
 0x15e   : > { %v735_v23 = vadd.f32 %v734_v22, %v525_v21 }
 0x160   : > { %825 = vst.msk [vmem:[%s1427_s26 + $0x198] sm:$0xff] %vm773_vm0, %v735_v23  ;;  %v432_v24 = vpop.f32.mrf.mxu0  ;;  %v641_v25 = vpop.f32.mrf.mxu1 }
 0x161   : > { %v642_v26 = vadd.f32 %v641_v25, %v432_v24 }
 0x163   : > { %794 = vst.msk [vmem:[%s1427_s26 + $0xa0] sm:$0xff] %vm773_vm0, %v642_v26 }
 0x164   : > { %v528_v27 = vpop.f32.mrf.mxu2 }
 0x165   : > { %v737_v28 = vpop.f32.mrf.mxu3 }
 0x166   : > { %v738_v29 = vadd.f32 %v737_v28, %v528_v27 }
 0x168   : > { %826 = vst.msk [vmem:[%s1427_s26 + $0x1a0] sm:$0xff] %vm773_vm0, %v738_v29  ;;  %v435_v30 = vpop.f32.mrf.mxu0  ;;  %v644_v31 = vpop.f32.mrf.mxu1 }
 0x169   : > { %v645_v32 = vadd.f32 %v644_v31, %v435_v30 }
 0x16b   : > { %795 = vst.msk [vmem:[%s1427_s26 + $0xa8] sm:$0xff] %vm773_vm0, %v645_v32 }
 0x16c   : > { %v531_v33 = vpop.f32.mrf.mxu2 }
 0x16d   : > { %v740_v34 = vpop.f32.mrf.mxu3 }
 0x16e   : > { %v741_v35 = vadd.f32 %v740_v34, %v531_v33 }
 0x170   : > { %827 = vst.msk [vmem:[%s1427_s26 + $0x1a8] sm:$0xff] %vm773_vm0, %v741_v35  ;;  %v438_v36 = vpop.f32.mrf.mxu0  ;;  %v647_v37 = vpop.f32.mrf.mxu1 }
 0x171   : > { %v648_v38 = vadd.f32 %v647_v37, %v438_v36 }
 0x173   : > { %796 = vst.msk [vmem:[%s1427_s26 + $0xb0] sm:$0xff] %vm773_vm0, %v648_v38 }
 0x174   : > { %v534_v39 = vpop.f32.mrf.mxu2 }
 0x175   : > { %v743_v40 = vpop.f32.mrf.mxu3 }
 0x176   : > { %v744_v41 = vadd.f32 %v743_v40, %v534_v39 }
 0x178   : > { %828 = vst.msk [vmem:[%s1427_s26 + $0x1b0] sm:$0xff] %vm773_vm0, %v744_v41  ;;  %v441_v42 = vpop.f32.mrf.mxu0  ;;  %v650_v43 = vpop.f32.mrf.mxu1 }
 0x179   : > { %v651_v44 = vadd.f32 %v650_v43, %v441_v42 }
 0x17b   : > { %797 = vst.msk [vmem:[%s1427_s26 + $0xb8] sm:$0xff] %vm773_vm0, %v651_v44 }
 0x17c   : > { %v537_v45 = vpop.f32.mrf.mxu2 }
 0x17d   : > { %v746_v46 = vpop.f32.mrf.mxu3 }
 0x17e   : > { %v747_v47 = vadd.f32 %v746_v46, %v537_v45 }
 0x180   : > { %829 = vst.msk [vmem:[%s1427_s26 + $0x1b8] sm:$0xff] %vm773_vm0, %v747_v47  ;;  %v444_v48 = vpop.f32.mrf.mxu0  ;;  %v653_v49 = vpop.f32.mrf.mxu1 }
 0x181   : > { %v654_v50 = vadd.f32 %v653_v49, %v444_v48 }
 0x183   : > { %798 = vst.msk [vmem:[%s1427_s26 + $0xc0] sm:$0xff] %vm773_vm0, %v654_v50 }
 0x184   : > { %v540_v51 = vpop.f32.mrf.mxu2 }
 0x185   : > { %v749_v52 = vpop.f32.mrf.mxu3 }
 0x186   : > { %v750_v53 = vadd.f32 %v749_v52, %v540_v51 }
 0x188   : > { %830 = vst.msk [vmem:[%s1427_s26 + $0x1c0] sm:$0xff] %vm773_vm0, %v750_v53  ;;  %v447_v54 = vpop.f32.mrf.mxu0  ;;  %v656_v55 = vpop.f32.mrf.mxu1 }
 0x189   : > { %v657_v56 = vadd.f32 %v656_v55, %v447_v54 }
 0x18b   : > { %799 = vst.msk [vmem:[%s1427_s26 + $0xc8] sm:$0xff] %vm773_vm0, %v657_v56 }
 0x18c   : > { %v543_v57 = vpop.f32.mrf.mxu2 }
 0x18d   : > { %v752_v58 = vpop.f32.mrf.mxu3 }
 0x18e   : > { %v753_v59 = vadd.f32 %v752_v58, %v543_v57 }
 0x190   : > { %831 = vst.msk [vmem:[%s1427_s26 + $0x1c8] sm:$0xff] %vm773_vm0, %v753_v59  ;;  %v450_v60 = vpop.f32.mrf.mxu0  ;;  %v659_v61 = vpop.f32.mrf.mxu1 }
 0x191   : > { %v660_v62 = vadd.f32 %v659_v61, %v450_v60 }
 0x193   : > { %800 = vst.msk [vmem:[%s1427_s26 + $0xd0] sm:$0xff] %vm773_vm0, %v660_v62 }
 0x194   : > { %v546_v63 = vpop.f32.mrf.mxu2 }
 0x195   : > { %v755_v0 = vpop.f32.mrf.mxu3 }
 0x196   : > { %v756_v1 = vadd.f32 %v755_v0, %v546_v63 }
 0x198   : > { %832 = vst.msk [vmem:[%s1427_s26 + $0x1d0] sm:$0xff] %vm773_vm0, %v756_v1  ;;  %v453_v2 = vpop.f32.mrf.mxu0  ;;  %v662_v3 = vpop.f32.mrf.mxu1 }
 0x199   : > { %v663_v4 = vadd.f32 %v662_v3, %v453_v2 }
 0x19b   : > { %801 = vst.msk [vmem:[%s1427_s26 + $0xd8] sm:$0xff] %vm773_vm0, %v663_v4 }
 0x19c   : > { %v549_v5 = vpop.f32.mrf.mxu2 }
 0x19d   : > { %v758_v6 = vpop.f32.mrf.mxu3 }
 0x19e   : > { %v759_v7 = vadd.f32 %v758_v6, %v549_v5 }
 0x1a0   : > { %833 = vst.msk [vmem:[%s1427_s26 + $0x1d8] sm:$0xff] %vm773_vm0, %v759_v7  ;;  %v456_v8 = vpop.f32.mrf.mxu0  ;;  %v665_v9 = vpop.f32.mrf.mxu1 }
 0x1a1   : > { %v666_v10 = vadd.f32 %v665_v9, %v456_v8 }
 0x1a3   : > { %802 = vst.msk [vmem:[%s1427_s26 + $0xe0] sm:$0xff] %vm773_vm0, %v666_v10 }
 0x1a4   : > { %v552_v11 = vpop.f32.mrf.mxu2 }
 0x1a5   : > { %v761_v12 = vpop.f32.mrf.mxu3 }
 0x1a6   : > { %v762_v13 = vadd.f32 %v761_v12, %v552_v11 }
 0x1a8   : > { %834 = vst.msk [vmem:[%s1427_s26 + $0x1e0] sm:$0xff] %vm773_vm0, %v762_v13  ;;  %v459_v14 = vpop.f32.mrf.mxu0  ;;  %v668_v15 = vpop.f32.mrf.mxu1 }
 0x1a9   : > { %v669_v16 = vadd.f32 %v668_v15, %v459_v14 }
 0x1ab   : > { %803 = vst.msk [vmem:[%s1427_s26 + $0xe8] sm:$0xff] %vm773_vm0, %v669_v16 }
 0x1ac   : > { %v555_v17 = vpop.f32.mrf.mxu2 }
 0x1ad   : > { %v764_v18 = vpop.f32.mrf.mxu3 }
 0x1ae   : > { %v765_v19 = vadd.f32 %v764_v18, %v555_v17 }
 0x1b0   : > { %835 = vst.msk [vmem:[%s1427_s26 + $0x1e8] sm:$0xff] %vm773_vm0, %v765_v19  ;;  %v462_v20 = vpop.f32.mrf.mxu0  ;;  %v671_v21 = vpop.f32.mrf.mxu1 }
 0x1b1   : > { %v672_v22 = vadd.f32 %v671_v21, %v462_v20 }
 0x1b3   : > { %804 = vst.msk [vmem:[%s1427_s26 + $0xf0] sm:$0xff] %vm773_vm0, %v672_v22 }
 0x1b4   : > { %v558_v23 = vpop.f32.mrf.mxu2 }
 0x1b5   : > { %v767_v24 = vpop.f32.mrf.mxu3 }
 0x1b6   : > { %v768_v25 = vadd.f32 %v767_v24, %v558_v23 }
 0x1b8   : > { %836 = vst.msk [vmem:[%s1427_s26 + $0x1f0] sm:$0xff] %vm773_vm0, %v768_v25  ;;  %v465_v26 = vpop.f32.mrf.mxu0  ;;  %v674_v27 = vpop.f32.mrf.mxu1 }
 0x1b9   : > { %v675_v28 = vadd.f32 %v674_v27, %v465_v26 }
 0x1bb   : > { %805 = vst.msk [vmem:[%s1427_s26 + $0xf8] sm:$0xff] %vm773_vm0, %v675_v28 }
 0x1bc   : > { %v561_v29 = vpop.f32.mrf.mxu2 }
 0x1bd   : > { %v770_v30 = vpop.f32.mrf.mxu3 }
 0x1be   : > { %v771_v31 = vadd.f32 %v770_v30, %v561_v29 }
 0x1c0   : > { %837 = vst.msk [vmem:[%s1427_s26 + $0x1f8] sm:$0xff] %vm773_vm0, %v771_v31 }
 0x1c1 PF: > { %s15_s16 = sadd.s32 1, %s1154_s16   ;;  %s1648_s9 = smov %s1130_s10 }
 0x1c2   : > { %p12_p2 = scmp.ge.s32.totalorder %s15_s16, 10   ;;  %s1649_s10 = smov %s1134_s11 }
 0x1c3   : > { %s1650_s11 = smov %s1240_s29  ;;  %s1651_s12 = smov %s1146_s14 }
 0x1c4   : > { %s1652_s13 = smov %s1150_s15  ;;  %s1653_s14 = smov %s1656_s18 }
 0x1c5   : > { %s1654_s15 = smov %s1660_s19  ;;  %14 = sbr.rel (!%p12_p2) target bundleno = 5 (0x5), region = 68 }
 0x1ca   :  { %868 = vsyncpa [#allocation3], 1 }
 0x1cb   :  { %870 = vsyncpa [#allocation3 + $0x1], 1 }

</bundles_post_ra>
